<compile_context>
chip_gen: v5e
topology: v5e:2x2
jax: 0.10.0
libtpu: 0.0.40
codegen_flags: <defaults>
</compile_context>

<pallas_src>
import functools

import jax
import jax.numpy as jnp
from jax import lax
from jax.experimental import pallas as pl
from jax.experimental.pallas import tpu as pltpu


def _make_attention_kernel(head_dim: int):
    D = head_dim

    def kernel(x_ref, wqkv_ref, wout_ref, bias_ref, o_ref, acc_ref):
        # x_ref block: (1, N, C)  -- one batch element, resident across heads.
        # wqkv_ref:   (C, 3D)     -- this head's [q | k | v] projection (bf16,
        #                            softmax scale pre-folded into the q columns)
        # wout_ref:   (D, C)      -- this head's slab of the output projection (bf16)
        # bias_ref:   (1, C)      -- output bias (f32)
        # acc_ref:    (N, C) f32  -- output-projection accumulator across heads
        h = pl.program_id(1)

        x = x_ref[0].astype(jnp.bfloat16)                       # (N, C) bf16 MXU input

        # Per-head fused [q|k|v] projection, f32 accumulation on the MXU.
        qkv = jnp.dot(x, wqkv_ref[...],
                      preferred_element_type=jnp.float32)        # (N, 3D) f32

        q = qkv[:, :D].astype(jnp.bfloat16)                      # scale already folded in
        k = qkv[:, D:2 * D].astype(jnp.bfloat16)
        v = qkv[:, 2 * D:].astype(jnp.bfloat16)

        # scores = q @ k^T, contracting last dims (no materialized transpose).
        s = lax.dot_general(q, k,
                            dimension_numbers=(((1,), (1,)), ((), ())),
                            preferred_element_type=jnp.float32)  # (N, N) f32

        # Numerically stable softmax in f32; denominator via EUP approx reciprocal.
        s = s - jnp.max(s, axis=-1, keepdims=True)
        p = jnp.exp(s)
        attn = p * pl.reciprocal(jnp.sum(p, axis=-1, keepdims=True), approx=True)
        # attention_dropout(p=0.0) -> identity

        ctx = jnp.dot(attn.astype(jnp.bfloat16), v,
                      preferred_element_type=jnp.float32)        # (N, D) f32

        # This head's contribution to the output projection.
        contrib = jnp.dot(ctx.astype(jnp.bfloat16), wout_ref[...],
                          preferred_element_type=jnp.float32)    # (N, C) f32

        @pl.when(h == 0)
        def _():
            acc_ref[...] = jnp.zeros_like(acc_ref)

        acc_ref[...] += contrib

        @pl.when(h == pl.num_programs(1) - 1)
        def _():
            # proj_dropout(p=0.0) -> identity; single lane-dense store per step.
            o_ref[0] = (acc_ref[...] + bias_ref[...]).astype(o_ref.dtype)

    return kernel


def prepare_params(w_qkv, w_out, b_out, heads, weight_dtype=jnp.bfloat16):
    """One-time parameter re-layout (hoisted out of the per-call hot path).

    w_qkv: (3C, C) torch Linear layout; w_out: (C, C); b_out: (C,).
    Returns:
      wqkv_h: (heads, C, 3D) bf16, per head columns [q_h | k_h | v_h],
              with the 1/sqrt(C) softmax scale folded into the q columns.
      wout_h: (heads, D, C)  bf16, per-head row slab of Wout^T.
      bias:   (1, C) f32.
    """
    three_c, c = w_qkv.shape
    assert three_c == 3 * c
    d = c // heads
    scale = 1.0 / (c ** 0.5)     # module scales by 1/sqrt(dim), not 1/sqrt(head_dim)

    wqkv_t = jnp.transpose(w_qkv)                    # (C, 3C); columns = (3, H, D)
    wqkv_t = wqkv_t.reshape(c, 3, heads, d)
    wqkv_t = wqkv_t.at[:, 0].multiply(scale)         # fold scale into Q columns
    wqkv_h = jnp.transpose(wqkv_t, (2, 0, 1, 3)).reshape(heads, c, 3 * d)
    wqkv_h = wqkv_h.astype(weight_dtype)

    wout_h = jnp.transpose(w_out).reshape(heads, d, c).astype(weight_dtype)
    bias = b_out.reshape(1, c).astype(jnp.float32)
    return wqkv_h, wout_h, bias


@functools.partial(jax.jit, static_argnames=("heads",))
def attention_pallas(x, wqkv_h, wout_h, bias, *, heads):
    """x: (B, N, C); wqkv_h: (H, C, 3D); wout_h: (H, D, C); bias: (1, C)."""
    B, N, C = x.shape
    D = C // heads

    kernel = _make_attention_kernel(D)

    return pl.pallas_call(
        kernel,
        out_shape=jax.ShapeDtypeStruct((B, N, C), x.dtype),
        grid_spec=pltpu.PrefetchScalarGridSpec(
            num_scalar_prefetch=0,
            grid=(B, heads),
            in_specs=[
                pl.BlockSpec((1, N, C), lambda b, h: (b, 0, 0)),         # x (resident across heads)
                pl.BlockSpec((None, C, 3 * D), lambda b, h: (h, 0, 0)),  # per-head qkv weights
                pl.BlockSpec((None, D, C), lambda b, h: (h, 0, 0)),      # per-head out-proj slab
                pl.BlockSpec((1, C), lambda b, h: (0, 0)),               # bias
            ],
            out_specs=pl.BlockSpec((1, N, C), lambda b, h: (b, 0, 0)),
            scratch_shapes=[pltpu.VMEM((N, C), jnp.float32)],            # cross-head accumulator
        ),
        compiler_params=pltpu.CompilerParams(
            dimension_semantics=("parallel", "arbitrary"),
            vmem_limit_bytes=32 * 1024 * 1024),
    )(x, wqkv_h, wout_h, bias)


def attention_ref(x, w_qkv, w_out, b_out, heads):
    """Pure-JAX reference mirroring the PyTorch forward (f32)."""
    b, n, c = x.shape
    d = c // heads
    scale = 1.0 / (c ** 0.5)
    qkv = x @ w_qkv.T                                   # (b, n, 3c)
    qkv = qkv.reshape(b, n, 3, heads, d)
    q, k, v = jnp.transpose(qkv, (2, 0, 3, 1, 4))       # each (b, h, n, d)
    dot = jnp.einsum("bhnd,bhmd->bhnm", q, k) * scale
    attn = jax.nn.softmax(dot, axis=-1)
    y = jnp.einsum("bhnm,bhmd->bhnd", attn, v)
    y = jnp.transpose(y, (0, 2, 1, 3)).reshape(b, n, c)
    return y @ w_out.T + b_out


if __name__ == "__main__":
    # Small shapes consistent with the module: batch=2, seq=8, dim=32, heads=4.
    B, N, C, HEADS = 2, 8, 32, 4

    key = jax.random.PRNGKey(0)
    kx, kqkv, kw, kb = jax.random.split(key, 4)

    x = jax.random.normal(kx, (B, N, C), dtype=jnp.float32)
    # Deterministic synthetic parameters (torch Linear layout: (out, in)).
    w_qkv = jax.random.normal(kqkv, (3 * C, C), dtype=jnp.float32) * 0.05
    w_out = jax.random.normal(kw, (C, C), dtype=jnp.float32) * 0.05
    b_out = jax.random.normal(kb, (C,), dtype=jnp.float32) * 0.05

    # One-time parameter re-layout (outside the per-call hot path).
    wqkv_h, wout_h, bias = prepare_params(w_qkv, w_out, b_out, HEADS)

    out = attention_pallas(x, wqkv_h, wout_h, bias, heads=HEADS)
    out = jax.block_until_ready(out)

    ref = attention_ref(x, w_qkv, w_out, b_out, HEADS)
    assert out.shape == (B, N, C)
    # bf16 MXU inputs (f32 accumulation) -> slightly looser tolerance than pure f32.
    assert jnp.allclose(out, ref, rtol=2e-2, atol=2e-2), "mismatch vs reference"

    print("KERNEL_OK")
</pallas_src>

<mosaic_0001>
module attributes {stable_mosaic.version = 11 : i64} {
  func.func @kernel(%arg0: i32, %arg1: i32, %arg2: memref<1x8x32xf32, #tpu.memory_space<vmem>>, %arg3: memref<1x32x24xbf16, #tpu.memory_space<vmem>>, %arg4: memref<1x8x32xbf16, #tpu.memory_space<vmem>>, %arg5: memref<1x32xf32, #tpu.memory_space<vmem>>, %arg6: memref<1x8x32xf32, #tpu.memory_space<vmem>>, %arg7: memref<8x32xf32, #tpu.memory_space<vmem>>) attributes {dimension_semantics = [#tpu.dimension_semantics<parallel>, #tpu.dimension_semantics<arbitrary>], iteration_bounds = array<i64: 2, 4>, scalar_prefetch = 0 : i64, scratch_operands = 1 : i64, tpu.core_type = #tpu.core_type<tc>, window_params = [{transform_indices = @transform_0, window_bounds = array<i64: 1, 8, 32>}, {transform_indices = @transform_1, window_bounds = array<i64: 1, 32, 24>}, {transform_indices = @transform_2, window_bounds = array<i64: 1, 8, 32>}, {pipeline_mode = #tpu.pipeline_mode<synchronous>, transform_indices = @transform_3, window_bounds = array<i64: 1, 32>}, {transform_indices = @transform_4, window_bounds = array<i64: 1, 8, 32>}]} {
    %c0 = arith.constant 0 : index
    %c0_0 = arith.constant 0 : index
    %c0_1 = arith.constant 0 : index
    %0 = vector.load %arg2[%c0, %c0_0, %c0_1] : memref<1x8x32xf32, #tpu.memory_space<vmem>>, vector<1x8x32xf32>
    %1 = vector.shape_cast %0 : vector<1x8x32xf32> to vector<8x32xf32>
    %2 = arith.truncf %1 : vector<8x32xf32> to vector<8x32xbf16>
    %c0_2 = arith.constant 0 : index
    %c0_3 = arith.constant 0 : index
    %c0_4 = arith.constant 0 : index
    %3 = vector.load %arg3[%c0_2, %c0_3, %c0_4] : memref<1x32x24xbf16, #tpu.memory_space<vmem>>, vector<1x32x24xbf16>
    %4 = vector.shape_cast %3 : vector<1x32x24xbf16> to vector<32x24xbf16>
    %cst = arith.constant dense<0.000000e+00> : vector<8x24xf32>
    %5 = tpu.matmul %2, %4, %cst {dimension_numbers = #tpu.dot_dimension_numbers<[1], [0], [0], [1], [0, 0, 1, 1], [], []>} : vector<8x32xbf16>, vector<32x24xbf16>, vector<8x24xf32> -> vector<8x24xf32>
    %6 = vector.extract_strided_slice %5 {offsets = [0, 0], sizes = [8, 8], strides = [1, 1]} : vector<8x24xf32> to vector<8x8xf32>
    %7 = arith.truncf %6 : vector<8x8xf32> to vector<8x8xbf16>
    %8 = vector.extract_strided_slice %5 {offsets = [0, 8], sizes = [8, 8], strides = [1, 1]} : vector<8x24xf32> to vector<8x8xf32>
    %9 = arith.truncf %8 : vector<8x8xf32> to vector<8x8xbf16>
    %10 = vector.extract_strided_slice %5 {offsets = [0, 16], sizes = [8, 8], strides = [1, 1]} : vector<8x24xf32> to vector<8x8xf32>
    %11 = arith.truncf %10 : vector<8x8xf32> to vector<8x8xbf16>
    %cst_5 = arith.constant dense<0.000000e+00> : vector<8x8xf32>
    %12 = tpu.matmul %7, %9, %cst_5 {dimension_numbers = #tpu.dot_dimension_numbers<[1], [1], [0], [0], [0, 0, 1, 0], [], []>} : vector<8x8xbf16>, vector<8x8xbf16>, vector<8x8xf32> -> vector<8x8xf32>
    %cst_6 = arith.constant dense<0xFF800000> : vector<8xf32>
    %13 = vector.multi_reduction <maximumf>, %12, %cst_6 [1] : vector<8x8xf32> to vector<8xf32>
    %14 = vector.shape_cast %13 : vector<8xf32> to vector<8x1xf32>
    %15 = vector.broadcast %14 : vector<8x1xf32> to vector<8x8xf32>
    %16 = arith.subf %12, %15 : vector<8x8xf32>
    %17 = math.exp %16 : vector<8x8xf32>
    %cst_7 = arith.constant dense<0.000000e+00> : vector<8xf32>
    %18 = vector.multi_reduction <add>, %17, %cst_7 [1] : vector<8x8xf32> to vector<8xf32>
    %19 = vector.shape_cast %18 : vector<8xf32> to vector<8x1xf32>
    %20 = tpu.reciprocal %19 {approx = true} : vector<8x1xf32> -> vector<8x1xf32>
    %21 = vector.broadcast %20 : vector<8x1xf32> to vector<8x8xf32>
    %22 = arith.mulf %17, %21 : vector<8x8xf32>
    %23 = arith.truncf %22 : vector<8x8xf32> to vector<8x8xbf16>
    %cst_8 = arith.constant dense<0.000000e+00> : vector<8x8xf32>
    %24 = tpu.matmul %23, %11, %cst_8 {dimension_numbers = #tpu.dot_dimension_numbers<[1], [0], [0], [1], [0, 0, 1, 1], [], []>} : vector<8x8xbf16>, vector<8x8xbf16>, vector<8x8xf32> -> vector<8x8xf32>
    %25 = arith.truncf %24 : vector<8x8xf32> to vector<8x8xbf16>
    %c0_9 = arith.constant 0 : index
    %c0_10 = arith.constant 0 : index
    %c0_11 = arith.constant 0 : index
    %26 = vector.load %arg4[%c0_9, %c0_10, %c0_11] : memref<1x8x32xbf16, #tpu.memory_space<vmem>>, vector<1x8x32xbf16>
    %27 = vector.shape_cast %26 : vector<1x8x32xbf16> to vector<8x32xbf16>
    %cst_12 = arith.constant dense<0.000000e+00> : vector<8x32xf32>
    %28 = tpu.matmul %25, %27, %cst_12 {dimension_numbers = #tpu.dot_dimension_numbers<[1], [0], [0], [1], [0, 0, 1, 1], [], []>} : vector<8x8xbf16>, vector<8x32xbf16>, vector<8x32xf32> -> vector<8x32xf32>
    %c0_i32 = arith.constant 0 : i32
    %29 = arith.cmpi eq, %arg1, %c0_i32 : i32
    %30 = arith.extui %29 : i1 to i32
    %c0_i32_13 = arith.constant 0 : i32
    %31 = arith.cmpi ne, %30, %c0_i32_13 : i32
    scf.if %31 {
      %cst_19 = arith.constant 0.000000e+00 : f32
      %38 = vector.broadcast %cst_19 : f32 to vector<8x32xf32>
      %c0_20 = arith.constant 0 : index
      %c0_21 = arith.constant 0 : index
      %39 = vector.load %arg7[%c0_20, %c0_21] : memref<8x32xf32, #tpu.memory_space<vmem>>, vector<8x32xf32>
      tpu.vector_store %arg7[%c0_20, %c0_21], %38 {strides = array<i32>} : memref<8x32xf32, #tpu.memory_space<vmem>>, vector<8x32xf32>,
    } else {
    }
    %c0_14 = arith.constant 0 : index
    %c0_15 = arith.constant 0 : index
    %32 = vector.load %arg7[%c0_14, %c0_15] : memref<8x32xf32, #tpu.memory_space<vmem>>, vector<8x32xf32>
    %33 = arith.addf %32, %28 : vector<8x32xf32>
    %c0_16 = arith.constant 0 : index
    %c0_17 = arith.constant 0 : index
    %34 = vector.load %arg7[%c0_16, %c0_17] : memref<8x32xf32, #tpu.memory_space<vmem>>, vector<8x32xf32>
    tpu.vector_store %arg7[%c0_16, %c0_17], %33 {strides = array<i32>} : memref<8x32xf32, #tpu.memory_space<vmem>>, vector<8x32xf32>,
    %c3_i32 = arith.constant 3 : i32
    %35 = arith.cmpi eq, %arg1, %c3_i32 : i32
    %36 = arith.extui %35 : i1 to i32
    %c0_i32_18 = arith.constant 0 : i32
    %37 = arith.cmpi ne, %36, %c0_i32_18 : i32
    scf.if %37 {
      %c0_19 = arith.constant 0 : index
      %c0_20 = arith.constant 0 : index
      %38 = vector.load %arg7[%c0_19, %c0_20] : memref<8x32xf32, #tpu.memory_space<vmem>>, vector<8x32xf32>
      %c0_21 = arith.constant 0 : index
      %c0_22 = arith.constant 0 : index
      %39 = vector.load %arg5[%c0_21, %c0_22] : memref<1x32xf32, #tpu.memory_space<vmem>>, vector<1x32xf32>
      %40 = vector.broadcast %39 : vector<1x32xf32> to vector<8x32xf32>
      %41 = arith.addf %38, %40 : vector<8x32xf32>
      %c0_23 = arith.constant 0 : index
      %c0_24 = arith.constant 0 : index
      %c0_25 = arith.constant 0 : index
      %42 = vector.load %arg6[%c0_23, %c0_24, %c0_25] : memref<1x8x32xf32, #tpu.memory_space<vmem>>, vector<1x8x32xf32>
      %43 = vector.shape_cast %42 : vector<1x8x32xf32> to vector<8x32xf32>
      %44 = vector.shape_cast %41 : vector<8x32xf32> to vector<1x8x32xf32>
      tpu.vector_store %arg6[%c0_23, %c0_24, %c0_25], %44 {strides = array<i32>} : memref<1x8x32xf32, #tpu.memory_space<vmem>>, vector<1x8x32xf32>,
    } else {
    }
    return
  }
  func.func @transform_0(%arg0: i32, %arg1: i32) -> (i32, i32, i32) {
    %c0_i32 = arith.constant 0 : i32
    %c0_i32_0 = arith.constant 0 : i32
    %c0_i32_1 = arith.constant 0 : i32
    return %arg0, %c0_i32, %c0_i32_0 : i32, i32, i32
  }
  func.func @transform_1(%arg0: i32, %arg1: i32) -> (i32, i32, i32) {
    %c0_i32 = arith.constant 0 : i32
    %c0_i32_0 = arith.constant 0 : i32
    %c0_i32_1 = arith.constant 0 : i32
    return %arg1, %c0_i32, %c0_i32_0 : i32, i32, i32
  }
  func.func @transform_2(%arg0: i32, %arg1: i32) -> (i32, i32, i32) {
    %c0_i32 = arith.constant 0 : i32
    %c0_i32_0 = arith.constant 0 : i32
    %c0_i32_1 = arith.constant 0 : i32
    return %arg1, %c0_i32, %c0_i32_0 : i32, i32, i32
  }
  func.func @transform_3(%arg0: i32, %arg1: i32) -> (i32, i32) {
    %c0_i32 = arith.constant 0 : i32
    %c0_i32_0 = arith.constant 0 : i32
    %c0_i32_1 = arith.constant 0 : i32
    return %c0_i32, %c0_i32_0 : i32, i32
  }
  func.func @transform_4(%arg0: i32, %arg1: i32) -> (i32, i32, i32) {
    %c0_i32 = arith.constant 0 : i32
    %c0_i32_0 = arith.constant 0 : i32
    %c0_i32_1 = arith.constant 0 : i32
    return %arg0, %c0_i32, %c0_i32_0 : i32, i32, i32
  }
}

</mosaic_0001>

<bundles_post_ra>
// kernel: attention_pallas.1
= control target key start
LH: loop header
LB: loop body
LE: loop exit
PB: predicated region body
PF: predicated region fallthrough
CT: control target
= control target key end

     0   :  { %9 = vsyncpa [#allocation4], 0  ;;  %s871_s0 = inlined_call_operand.vmem [shape: f32[2,8,32], index: 0, kind: input, shape index: {}]   ;;  %s872_s1 = inlined_call_operand.vmem [shape: bf16[4,32,24], index: 1, kind: input, shape index: {}]   ;;  %s873_s2 = inlined_call_operand.vmem [shape: bf16[4,8,32], index: 2, kind: input, shape index: {}]   ;;  %s874_s3 = inlined_call_operand.vmem [shape: f32[1,32], index: 3, kind: input, shape index: {}]   ;;  %s875_s4 = inlined_call_operand.hbm [shape: f32[2,8,32], index: 4, kind: output, shape index: {}]  }
   0x1   :  { %11 = vsyncpa [#allocation4 + $0x1], 0  ;;  %s720_s15 = smov 0   ;;  %s722_s16 = smov 0  }
   0x2   :  { %s724_s17 = smov 0   ;;  %s726_s18 = smov 0  }
   0x3   :  { %s728_s19 = smov 0   ;;  %s730_s20 = smov 0  }
   0x4   :  { %s732_s21 = smov 0   ;;  %s734_s22 = smov 0  }
   0x5 LB: > { %s486_s23 = sadd.s32 4294967295, %s690_s22   ;;  %s487_s24 = sadd.s32 4294967294, %s690_s22   ;;  %s690_s22 = sphi %s734_s22, %s17_s22   ;;  %s686_s21 = sphi %s732_s21, %s884_s21   ;;  %s682_s20 = sphi %s730_s20, %s883_s20   ;;  %s678_s19 = sphi %s728_s19, %s882_s19   ;;  %s674_s18 = sphi %s726_s18, %s881_s18   ;;  %s670_s17 = sphi %s724_s17, %s880_s17   ;;  %s666_s16 = sphi %s722_s16, %s879_s16   ;;  %s662_s15 = sphi %s720_s15, %s878_s15  }
   0x6   : > { %s26_s25 = sadd.s32 1, %s682_s20  ;;  %s29_s26 = sadd.s32 1, %s686_s21 }
   0x7   : > { %p27_p0 = scmp.ge.s32.totalorder %s26_s25, 4  ;;  %p145_p1 = scmp.ne.s32.totalorder %s670_s17, %s666_s16 }
   0x8   : > { %p146_p2 = scmp.eq.s32.totalorder %s486_s23, 7  ;;  %p151_p4 = scmp.ne.s32.totalorder %s666_s16, %s662_s15 }
   0x9   : > { %s886_s25 = smov (%p27_p0, %s26_s25), 0  ;;  %s888_s26 = smov (!%p27_p0, %s29_s26), %s686_s21 }
   0xa   : > { %p769_p3 = por %p146_p2, %p145_p1  ;;  %p31_p5 = scmp.ge.s32.totalorder %s888_s26, 2 }
   0xb   : > { %p152_p6 = scmp.eq.s32.totalorder %s487_s24, 7  ;;  %p490_p7 = scmp.ge.s32.totalorder %s690_s22, 1 }
   0xc   : > { %p195_p8 = scmp.lt.s32.totalorder %s690_s22, 9  ;;  %s890_s26 = smov (%p31_p5, %s888_s26), 0 }
   0xd   : > { %p779_p9 = por %p152_p6, %p151_p4  ;;  %s132_s29 = ssub.s32 %s686_s21, %s890_s26 }
   0xe   : > { %p196_p10 = pnand %p490_p7, %p195_p8  ;;  %s135_s30 = sadd.s32 1, %s670_s17 }
   0xf   : > { %p133_p11 = scmp.eq.s32.totalorder %s132_s29, 0  ;;  %s226_s6 = sand.u32 (!%p196_p10), 1, %s666_s16  }
  0x10   : > { %199 = sbr.rel (%p196_p10) target bundleno = 994 (0x3e2), region = 36  ;;  %p233_p12 = scmp.lt.s32.totalorder (!%p196_p10), %s674_s18, 3 }
  0x11   : > { %s787_s5 = scalar_select %p133_p11, %s670_s17, %s135_s30  }
  0x12   : > { %s793_s7 = sshll.u32 (!%p196_p10), %s226_s6, 3  ;;  %p229_p13 = scmp.lt.s32.totalorder (!%p196_p10), %s678_s19, 1 }
  0x13   : > { %s692_s30 = smov (!%p196_p10), 120   ;;  %p508_p0 = scmp.ne.s32.totalorder (!%p196_p10), %s674_s18, 0 }
  0x15   : > { %s797_s8 = scalar_select %p233_p12, %s674_s18, 3  ;;  %vm261_vm0 = vcmask 261120   ;;  %vm282_vm1 = vcmask 64512   ;;  %vm319_vm2 = vcmask 1043456  }
  0x16   : > { %s230_s9 = scalar_select %p229_p13, %s678_s19, 1 }
  0x17   : > { %s514_s10 = sshll.u32 %s797_s8, 4 }
  0x18   : > { %s237_s13 = scalar_lea.vmem %s872_s1, %s514_s10  ;;  %s492_s14 = sshll.u32 %s230_s9, 3 }
  0x19   : > { %v516_v0 = vld [vmem:[%s237_s13 + $0x8] sm:$0xff]  ;;  %s232_s29 = scalar_lea.vmem %s871_s0, %s492_s14  ;;  %v515_v1 = vld [vmem:[%s237_s13] sm:$0xff]  ;;  %s693_s9 = smov 112  }
  0x1a   : > { %271 = vmatpush.bf16.msra.mxu0 %v516_v0  ;;  %v243_v2 = vld [vmem:[%s232_s29] sm:$0xff]  ;;  %s495_s10 = sshll.u32 %s797_s8, 2  ;;  %s228_s14 = scalar_lea.vmem [#allocation3], %s793_s7 }
  0x1b   : > { %v244_v3 = vpack.c.bf16 %v243_v2, %v243_v2  ;;  %s241_s13 = scalar_lea.vmem %s873_s2, %s495_s10 }
  0x1c   : > { %v337_v23 = vld [vmem:[%s241_s13] sm:$0xf] }
  0x1d   : > { %v342_v24 = vsel %vm319_vm2, %v337_v23, 0 }
  0x1e   : > { %272 = vmatpush.bf16.msra.mxu0 %v515_v1  ;;  %351 = vmatpush.bf16.msra.mxu3 %v342_v24 }
  0x21   : > { %504 = vmatmul.msk.bf16.vlgmr.msra.gmra.mxu0 %vm261_vm0, %v244_v3 }
  0x9e   : > { %v274_v4 = vpop.f32.mrf.mxu0 }
  0x9f   : > { %v278_v5 = vpack.c.bf16 %v274_v4, %v274_v4 }
  0xa1   : > { %280 = vrot.lane.b32.xlu0 %v278_v5, %s692_s30 }
  0xa6   : > { %v276_v6 = vpop.f32.mrf.mxu0 }
 0x113   : > { %v281_v7 = vpop.permute.xlu0 %280 }
 0x114   : > { %v287_v8 = vsel %vm282_vm1, %v281_v7, 0 }
 0x115   : > { %296 = vmatpush.bf16.xpose.msra.mxu1 %v287_v8 }
 0x11c   : > { %505 = vmatmul.msk.bf16.vlgmr.msra.gmra.mxu1 %vm282_vm1, %v278_v5 }
 0x199   : > { %v298_v9 = vpop.f32.mrf.mxu1 }
 0x19a   : > { %v302_v10 = vsel %vm282_vm1, %v298_v9, -inf }
 0x19b   : > { %303 = vmax.xlane.f32.xlu0 %v302_v10 }
 0x1a1   : > { %v300_v11 = vpop.f32.mrf.mxu1 }
 0x20e   : > { %v304_v12 = vpop.xlane.xlu0 %303 }
 0x20f   : > { %v305_v13 = vsub.f32 %v298_v9, %v304_v12 }
 0x211   : > { %v306_v14 = vmul.f32 1.442695, %v305_v13 }
 0x213   : > { %591 = vpow2.f32 %v306_v14 }
 0x219   : > { %v592_v15 = vpop.eup %591 }
 0x21a   : > { %v308_v16 = vsel %vm282_vm1, %v592_v15, 0.0 }
 0x21b   : > { %309 = vadd.xlane.f32.xlu1 %v308_v16 }
 0x234   : > { %314 = vrot.lane.b32.xlu1 %v278_v5, %s693_s9 }
 0x28e   : > { %v310_v17 = vpop.xlane.xlu1 %309 }
 0x28f   : > { %593 = vrcp.f32 %v310_v17 }
 0x295   : > { %v594_v18 = vpop.eup %593 }
 0x296   : > { %v312_v19 = vmul.f32 %v594_v18, %v592_v15 }
 0x298   : > { %v313_v22 = vpack.c.bf16 %v312_v19, %v312_v19 }
 0x2a6   : > { %v315_v20 = vpop.permute.xlu1 %314 }
 0x2a7   : > { %v321_v21 = vsel %vm319_vm2, %v315_v20, 0 }
 0x2a8   : > { %330 = vmatpush.bf16.msra.mxu2 %v321_v21 }
 0x2ab   : > { %506 = vmatmul.msk.bf16.vlgmr.msra.gmra.mxu2 %vm282_vm1, %v313_v22 }
 0x32e   : > { %v332_v25 = vpop.f32.mrf.mxu2 }
 0x32f   : > { %v336_v26 = vpack.c.bf16 %v332_v25, %v332_v25 }
 0x331   : > { %507 = vmatmul.msk.bf16.vlgmr.msra.gmra.mxu3 %vm282_vm1, %v336_v26 }
 0x336   : > { %v334_v27 = vpop.f32.mrf.mxu2 }
 0x3b4   : > { %v353_v28 = vpop.f32.mrf.mxu3 }
 0x3b8   : > { %360 = sbr.rel (%p508_p0) target bundleno = 959 (0x3bf), region = 40 }
 0x3bc   : > { %v355_v29 = vpop.f32.mrf.mxu3 }
 0x3bd   : > { %v694_v30 = vmov 0.0  }
 0x3be   : > { %361 = vst.msk [vmem:[#allocation2] sm:$0xff] %vm261_vm0, %v694_v30 }
 0x3bf PF: > { %p509_p1 = scmp.ne.s32.totalorder %s674_s18, 3 }
 0x3c4   : > { %368 = sbr.rel (%p509_p1) target bundleno = 979 (0x3d3), region = 44 }
 0x3c5   : > { %v362_v31 = vld [vmem:[#allocation2] sm:$0xff] }
 0x3c6   : > { %v363_v32 = vadd.f32 %v362_v31, %v353_v28 }
 0x3c8   : > { %364 = vst.msk [vmem:[#allocation2] sm:$0xff] %vm261_vm0, %v363_v32 }
 0x3c9   : > { %v595_v34 = vld [vmem:[%s874_s3] ss:$0 sm:$0xff] }
 0x3cf   : > { %v369_v33 = vld [vmem:[#allocation2] sm:$0xff] }
 0x3d0   : > { %v374_v35 = vadd.f32 %v595_v34, %v369_v33 }
 0x3d2   : > { %375 = vst.msk [vmem:[%s228_s14] sm:$0xff] %vm261_vm0, %v374_v35 }
 0x3d3 PF: > { %s511_s7 = sshll.u32 %s678_s19, 3  ;;  %s389_s9 = sshll.u32 %s228_s14, 4  ;;  %s390_s9 = int_to_ptr.vmem [resolvable:$true] %s389_s9 }
 0x3d4   : > { %s387_s30 = scalar_lea.hbm %s875_s4, %s511_s7  ;;  %s377_s10 = scalar_lea.sflag [#allocation4], %s226_s6 }
 0x3d5   : > { %s391_s18 = sshll.u32 %s387_s30, 4  ;;  %s616_s19 = scalar_lea.hbm %s875_s4, 16  ;;  %s392_s18 = int_to_ptr.hbm [resolvable:$true] %s391_s18 }
 0x3d6   : > { %s610_s11 = sshra.s32 %s392_s18, 4  ;;  %s611_s11 = int_to_ptr.hbm [resolvable:$true] %s610_s11 }
 0x3d7   : > { %s612_s12 = scalar_lea.hbm %s611_s11, 8  ;;  %p617_p6 = scmp.lt.s32.totalorder %s611_s11, %s875_s4 }
 0x3d8   : > { %p613_p2 = scmp.ne.s32.totalorder %s611_s11, %s612_s12  ;;  %p618_p7 = scmp.lt.s32.totalorder %s616_s19, %s612_s12 }
 0x3da   : > { %p614_p4 = pnand %p613_p2, %p769_p3  ;;  %p619_p8 = por %p618_p7, %p617_p6 }
 0x3dc   : > { %p615_p5 = pneg %p614_p4 }
 0x3de   : > { %p620_p10 = pnand %p619_p8, %p615_p5 }
 0x3e0   : > { %623 = shalt.err (!%p620_p10)
}
 0x3e1   : > { %517 = dma.vmem_to_hbm [thread:$0]  (%p769_p3), %s390_s9, 128, %s392_s18, %s377_s10  }
 0x3e2 PF: > { %p523_p11 = scmp.ge.s32.totalorder %s690_s22, 2  ;;  %s403_s6 = sand.u32 1, %s662_s15  }
 0x3e3   : > { %s404_s14 = scalar_lea.sflag [#allocation4], %s403_s6 }
 0x3e4   : > { %p520_p12 = pnand %p523_p11, %p779_p9 }
 0x3e6   : > { %p521_p13 = pneg %p520_p12 }
 0x3e8   : > { %657 = dma.done.wait (%p521_p13), %s404_s14, 128  }
 0x3e9   : > { %659 = vsyncadd (%p521_p13), %s404_s14, 4294967168  ;;  %s17_s22 = sadd.s32 1, %s690_s22   ;;  %s878_s15 = smov %s666_s16 }
 0x3ea   : > { %p14_p0 = scmp.ge.s32.totalorder %s17_s22, 10   ;;  %s879_s16 = smov %s670_s17 }
 0x3eb   : > { %s880_s17 = smov %s787_s5  ;;  %s881_s18 = smov %s682_s20 }
 0x3ec   : > { %s882_s19 = smov %s686_s21  ;;  %s883_s20 = smov %s886_s25 }
 0x3ed   : > { %s884_s21 = smov %s890_s26  ;;  %16 = sbr.rel (!%p14_p0) target bundleno = 5 (0x5), region = 85 }
 0x3f2   :  { %410 = vsyncpa [#allocation4], 1 }
 0x3f3   :  { %412 = vsyncpa [#allocation4 + $0x1], 1 }

</bundles_post_ra>
